<compile_context>
chip_gen: v5e
topology: v5e:2x2
jax: 0.10.0
libtpu: 0.0.40
codegen_flags: <defaults>
</compile_context>

<pallas_src>
import jax
import jax.numpy as jnp
from jax import lax
from jax.experimental import pallas as pl
from jax.experimental.pallas import tpu as pltpu

LANE = 128
ACC_ROWS = 8                   # f32 (8,128) accumulator tile
DEFAULT_TILE_ROWS = 4096       # 4096 x 128 x 4B = 2 MiB per f32 input block
DEFAULT_SLAB_ROWS = 512        # slab-wise accumulation granularity (256 KiB f32)
VMEM_LIMIT_BYTES = 32 * 1024 * 1024   # safe on v5e/v6e/v7x (v7x physical = 64 MiB)


def _round_up(x: int, m: int) -> int:
    return ((x + m - 1) // m) * m


def _make_profit_kernel(tr: int, slab_rows: int, g_inner: int, needs_mask: bool):
    n_slabs = tr // slab_rows

    def kernel(thr_ref, meta_ref, yp_ref, yt_ref, out_p_ref, out_a_ref):
        i = pl.program_id(1)

        # Output blocks are resident across the inner ("arbitrary") axis and
        # double as accumulators (P3 pattern): zero them on the first step.
        @pl.when(i == 0)
        def _():
            out_p_ref[...] = jnp.zeros_like(out_p_ref)
            out_a_ref[...] = jnp.zeros_like(out_a_ref)

        st = thr_ref[0]            # short threshold (SMEM scalar)
        lt = thr_ref[1]            # long threshold  (SMEM scalar)

        if needs_mask:
            valid_rows = meta_ref[0]
            block_row0 = (pl.program_id(0) * g_inner + i) * tr
            # Hoisted once per grid step (JAX does not CSE broadcast_in_dim).
            row_iota = lax.broadcasted_iota(jnp.int32, (slab_rows, LANE), 0)

        def slab(s, carry):
            r0 = pl.multiple_of(s * slab_rows, slab_rows)
            yp = yp_ref[pl.ds(r0, slab_rows), :].astype(jnp.float32)
            yt = yt_ref[pl.ds(r0, slab_rows), :].astype(jnp.float32)
            if needs_mask:
                # Rows at/after the valid boundary contribute 0 to both sums.
                limit = valid_rows - block_row0 - s * slab_rows
                yt = jnp.where(row_iota < limit, yt, 0.0)
            # torch.heaviside(x, 0): 1.0 for x > 0, else 0.0 (0 at equality).
            # profits = (long_pos - short_pos) * y_true, fused into two selects.
            profits = jnp.where(yp > lt, yt, 0.0) - jnp.where(yp < st, yt, 0.0)
            out_p_ref[...] += profits.reshape(-1, ACC_ROWS, LANE).sum(axis=0)
            out_a_ref[...] += jnp.abs(yt).reshape(-1, ACC_ROWS, LANE).sum(axis=0)
            return carry

        lax.fori_loop(0, n_slabs, slab, 0, unroll=True)

    return kernel


def profit_calculator_forward(y_pred, y_true, short_threshold=0.0, long_threshold=0.0,
                              tile_rows=DEFAULT_TILE_ROWS, core_split=1):
    """Pallas equivalent of ProfitCalculator.forward (returns a scalar ratio).

    core_split>1 shards the leading grid axis across TensorCores with
    CORE_PARALLEL (use 2 on v7x); leave at 1 on single-TC v5e/v6e.
    """
    y_pred = jnp.asarray(y_pred)
    y_true = jnp.asarray(y_true)
    assert y_pred.shape == y_true.shape

    # Stream a common native dtype (no wrapper-side f32 upcast of bf16 data).
    dtype = jnp.promote_types(y_pred.dtype, y_true.dtype)
    if jnp.dtype(dtype).itemsize > 4:
        dtype = jnp.float32
    sublane = {4: 8, 2: 16, 1: 32}[jnp.dtype(dtype).itemsize]

    n = y_pred.size
    flat_p = y_pred.reshape(-1).astype(dtype)
    flat_t = y_true.reshape(-1).astype(dtype)

    # Only pad when n is not a lane (128) multiple; the zero pad contributes 0
    # to both sums. Aligned inputs stream with no wrapper-side copy; ragged
    # row tails are masked inside the kernel instead of padded in HBM.
    if n % LANE != 0:
        pad = _round_up(n, LANE) - n
        flat_p = jnp.pad(flat_p, (0, pad))
        flat_t = jnp.pad(flat_t, (0, pad))
    rows = flat_p.size // LANE
    yp2 = flat_p.reshape(rows, LANE)
    yt2 = flat_t.reshape(rows, LANE)

    core_split = max(1, int(core_split))
    slab0 = max(sublane, ACC_ROWS)
    tr = min(int(tile_rows), _round_up(pl.cdiv(rows, core_split), slab0))
    tr = _round_up(tr, slab0)
    slab_rows = min(DEFAULT_SLAB_ROWS, tr)
    tr = _round_up(tr, slab_rows)               # guarantee tr % slab_rows == 0

    total_blocks = pl.cdiv(rows, tr)
    g_inner = pl.cdiv(total_blocks, core_split)
    needs_mask = (rows % tr != 0) or (total_blocks != core_split * g_inner)

    thr = jnp.array([short_threshold, long_threshold], dtype=jnp.float32)
    meta = jnp.array([rows], dtype=jnp.int32)

    def in_map(c, i, thr_ref, meta_ref):
        # Clamp so over-assigned blocks (uneven core split) stay in bounds;
        # their contribution is zeroed by the in-kernel row mask.
        return (jnp.minimum(c * g_inner + i, total_blocks - 1), 0)

    def out_map(c, i, thr_ref, meta_ref):
        return (c, 0)

    if core_split > 1:
        semantics = (pltpu.CORE_PARALLEL, pltpu.ARBITRARY)
    else:
        semantics = (pltpu.ARBITRARY, pltpu.ARBITRARY)

    out_p, out_a = pl.pallas_call(
        _make_profit_kernel(tr, slab_rows, g_inner, needs_mask),
        out_shape=(
            jax.ShapeDtypeStruct((core_split * ACC_ROWS, LANE), jnp.float32),
            jax.ShapeDtypeStruct((core_split * ACC_ROWS, LANE), jnp.float32),
        ),
        grid_spec=pltpu.PrefetchScalarGridSpec(
            num_scalar_prefetch=2,
            grid=(core_split, g_inner),
            in_specs=[
                pl.BlockSpec((tr, LANE), in_map),
                pl.BlockSpec((tr, LANE), in_map),
            ],
            out_specs=[
                pl.BlockSpec((ACC_ROWS, LANE), out_map),
                pl.BlockSpec((ACC_ROWS, LANE), out_map),
            ],
        ),
        compiler_params=pltpu.CompilerParams(
            dimension_semantics=semantics,
            vmem_limit_bytes=VMEM_LIMIT_BYTES),
    )(thr, meta, yp2, yt2)

    # profits.mean() / |y_true|.mean()  ==  sum(profits) / sum(|y_true|)
    # (unguarded 0/0 when y_true is all zeros, matching the PyTorch reference).
    return jnp.sum(out_p) / jnp.sum(out_a)


def _reference_forward(y_pred, y_true, short_threshold=0.0, long_threshold=0.0):
    y_pred = jnp.asarray(y_pred, jnp.float32)
    y_true = jnp.asarray(y_true, jnp.float32)
    short_pos = jnp.where(short_threshold - y_pred > 0, 1.0, 0.0)
    long_pos = jnp.where(y_pred - long_threshold > 0, 1.0, 0.0)
    profits = (long_pos - short_pos) * y_true
    return profits.mean() / jnp.abs(y_true).mean()


if __name__ == "__main__":
    key = jax.random.PRNGKey(0)
    k1, k2, k3, k4 = jax.random.split(key, 4)

    # Deterministic "parameters" matching nn.Parameter defaults in __init__.
    short_threshold = 0.0
    long_threshold = 0.0

    # Case 1: lane-aligned prediction / return series (16 x 128).
    y_pred = jax.random.normal(k1, (16, 128), dtype=jnp.float32) * 0.02
    y_true = jax.random.normal(k2, (16, 128), dtype=jnp.float32) * 0.01
    out = jax.block_until_ready(
        profit_calculator_forward(y_pred, y_true, short_threshold, long_threshold))
    ref = _reference_forward(y_pred, y_true, short_threshold, long_threshold)
    assert jnp.allclose(out, ref, rtol=1e-4, atol=1e-6), (out, ref)

    # Case 2: ragged shape (7 x 300) + nonzero thresholds, exercising the
    # in-kernel row mask and the SMEM threshold path.
    y_pred_r = jax.random.normal(k3, (7, 300), dtype=jnp.float32) * 0.02
    y_true_r = jax.random.normal(k4, (7, 300), dtype=jnp.float32) * 0.01
    out_r = jax.block_until_ready(
        profit_calculator_forward(y_pred_r, y_true_r, -0.005, 0.007))
    ref_r = _reference_forward(y_pred_r, y_true_r, -0.005, 0.007)
    assert jnp.allclose(out_r, ref_r, rtol=1e-4, atol=1e-6), (out_r, ref_r)

    print("KERNEL_OK")
</pallas_src>

<mosaic_0001>
module attributes {stable_mosaic.version = 11 : i64} {
  func.func @kernel(%arg0: i32, %arg1: i32, %arg2: memref<2xf32, #tpu.memory_space<smem>>, %arg3: memref<1xi32, #tpu.memory_space<smem>>, %arg4: memref<16x128xf32, #tpu.memory_space<vmem>>, %arg5: memref<16x128xf32, #tpu.memory_space<vmem>>, %arg6: memref<8x128xf32, #tpu.memory_space<vmem>>, %arg7: memref<8x128xf32, #tpu.memory_space<vmem>>) attributes {dimension_semantics = [#tpu.dimension_semantics<arbitrary>, #tpu.dimension_semantics<arbitrary>], iteration_bounds = array<i64: 1, 1>, scalar_prefetch = 2 : i64, scratch_operands = 0 : i64, tpu.core_type = #tpu.core_type<tc>, window_params = [{transform_indices = @transform_0, window_bounds = array<i64: 16, 128>}, {transform_indices = @transform_1, window_bounds = array<i64: 16, 128>}, {transform_indices = @transform_2, window_bounds = array<i64: 8, 128>}, {transform_indices = @transform_3, window_bounds = array<i64: 8, 128>}]} {
    %c0_i32 = arith.constant 0 : i32
    %0 = arith.cmpi eq, %arg1, %c0_i32 : i32
    %1 = arith.extui %0 : i1 to i32
    %c0_i32_0 = arith.constant 0 : i32
    %2 = arith.cmpi ne, %1, %c0_i32_0 : i32
    scf.if %2 {
      %cst_15 = arith.constant 0.000000e+00 : f32
      %31 = vector.broadcast %cst_15 : f32 to vector<8x128xf32>
      %c0_16 = arith.constant 0 : index
      %c0_17 = arith.constant 0 : index
      %32 = vector.load %arg6[%c0_16, %c0_17] : memref<8x128xf32, #tpu.memory_space<vmem>>, vector<8x128xf32>
      tpu.vector_store %arg6[%c0_16, %c0_17], %31 {strides = array<i32>} : memref<8x128xf32, #tpu.memory_space<vmem>>, vector<8x128xf32>,
      %cst_18 = arith.constant 0.000000e+00 : f32
      %33 = vector.broadcast %cst_18 : f32 to vector<8x128xf32>
      %c0_19 = arith.constant 0 : index
      %c0_20 = arith.constant 0 : index
      %34 = vector.load %arg7[%c0_19, %c0_20] : memref<8x128xf32, #tpu.memory_space<vmem>>, vector<8x128xf32>
      tpu.vector_store %arg7[%c0_19, %c0_20], %33 {strides = array<i32>} : memref<8x128xf32, #tpu.memory_space<vmem>>, vector<8x128xf32>,
    } else {
    }
    %c0 = arith.constant 0 : index
    %3 = memref.load %arg2[%c0] : memref<2xf32, #tpu.memory_space<smem>>
    %c1 = arith.constant 1 : index
    %4 = memref.load %arg2[%c1] : memref<2xf32, #tpu.memory_space<smem>>
    %c0_i32_1 = arith.constant 0 : i32
    %c16_i32 = arith.constant 16 : i32
    %5 = arith.muli %c0_i32_1, %c16_i32 : i32
    %6 = tpu.assume_multiple %5, 16 : i32
    %7 = arith.index_cast %6 : i32 to index
    %c0_2 = arith.constant 0 : index
    %8 = vector.load %arg4[%7, %c0_2] : memref<16x128xf32, #tpu.memory_space<vmem>>, vector<16x128xf32>
    %9 = arith.index_cast %6 : i32 to index
    %c0_3 = arith.constant 0 : index
    %10 = vector.load %arg5[%9, %c0_3] : memref<16x128xf32, #tpu.memory_space<vmem>>, vector<16x128xf32>
    %11 = vector.broadcast %4 : f32 to vector<16x128xf32>
    %12 = arith.cmpf ogt, %8, %11 : vector<16x128xf32>
    %cst = arith.constant 0.000000e+00 : f32
    %13 = vector.broadcast %cst : f32 to vector<16x128xf32>
    %14 = arith.select %12, %10, %13 : vector<16x128xi1>, vector<16x128xf32>
    %15 = vector.broadcast %3 : f32 to vector<16x128xf32>
    %16 = arith.cmpf olt, %8, %15 : vector<16x128xf32>
    %cst_4 = arith.constant 0.000000e+00 : f32
    %17 = vector.broadcast %cst_4 : f32 to vector<16x128xf32>
    %18 = arith.select %16, %10, %17 : vector<16x128xi1>, vector<16x128xf32>
    %19 = arith.subf %14, %18 : vector<16x128xf32>
    %c0_5 = arith.constant 0 : index
    %c0_6 = arith.constant 0 : index
    %20 = vector.load %arg6[%c0_5, %c0_6] : memref<8x128xf32, #tpu.memory_space<vmem>>, vector<8x128xf32>
    %21 = vector.shape_cast %19 : vector<16x128xf32> to vector<2x8x128xf32>
    %cst_7 = arith.constant dense<0.000000e+00> : vector<8x128xf32>
    %22 = vector.multi_reduction <add>, %21, %cst_7 [0] : vector<2x8x128xf32> to vector<8x128xf32>
    %23 = arith.addf %20, %22 : vector<8x128xf32>
    %c0_8 = arith.constant 0 : index
    %c0_9 = arith.constant 0 : index
    %24 = vector.load %arg6[%c0_8, %c0_9] : memref<8x128xf32, #tpu.memory_space<vmem>>, vector<8x128xf32>
    tpu.vector_store %arg6[%c0_8, %c0_9], %23 {strides = array<i32>} : memref<8x128xf32, #tpu.memory_space<vmem>>, vector<8x128xf32>,
    %c0_10 = arith.constant 0 : index
    %c0_11 = arith.constant 0 : index
    %25 = vector.load %arg7[%c0_10, %c0_11] : memref<8x128xf32, #tpu.memory_space<vmem>>, vector<8x128xf32>
    %26 = math.absf %10 : vector<16x128xf32>
    %27 = vector.shape_cast %26 : vector<16x128xf32> to vector<2x8x128xf32>
    %cst_12 = arith.constant dense<0.000000e+00> : vector<8x128xf32>
    %28 = vector.multi_reduction <add>, %27, %cst_12 [0] : vector<2x8x128xf32> to vector<8x128xf32>
    %29 = arith.addf %25, %28 : vector<8x128xf32>
    %c0_13 = arith.constant 0 : index
    %c0_14 = arith.constant 0 : index
    %30 = vector.load %arg7[%c0_13, %c0_14] : memref<8x128xf32, #tpu.memory_space<vmem>>, vector<8x128xf32>
    tpu.vector_store %arg7[%c0_13, %c0_14], %29 {strides = array<i32>} : memref<8x128xf32, #tpu.memory_space<vmem>>, vector<8x128xf32>,
    %c1_i32 = arith.constant 1 : i32
    return
  }
  func.func @transform_0(%arg0: i32, %arg1: i32, %arg2: memref<2xf32, #tpu.memory_space<smem>>, %arg3: memref<1xi32, #tpu.memory_space<smem>>) -> (i32, i32) {
    %c1_i32 = arith.constant 1 : i32
    %0 = arith.muli %arg0, %c1_i32 : i32
    %1 = arith.addi %0, %arg1 : i32
    %c0_i32 = arith.constant 0 : i32
    %2 = arith.minsi %1, %c0_i32 : i32
    %c0_i32_0 = arith.constant 0 : i32
    %c0_i32_1 = arith.constant 0 : i32
    return %2, %c0_i32_0 : i32, i32
  }
  func.func @transform_1(%arg0: i32, %arg1: i32, %arg2: memref<2xf32, #tpu.memory_space<smem>>, %arg3: memref<1xi32, #tpu.memory_space<smem>>) -> (i32, i32) {
    %c1_i32 = arith.constant 1 : i32
    %0 = arith.muli %arg0, %c1_i32 : i32
    %1 = arith.addi %0, %arg1 : i32
    %c0_i32 = arith.constant 0 : i32
    %2 = arith.minsi %1, %c0_i32 : i32
    %c0_i32_0 = arith.constant 0 : i32
    %c0_i32_1 = arith.constant 0 : i32
    return %2, %c0_i32_0 : i32, i32
  }
  func.func @transform_2(%arg0: i32, %arg1: i32, %arg2: memref<2xf32, #tpu.memory_space<smem>>, %arg3: memref<1xi32, #tpu.memory_space<smem>>) -> (i32, i32) {
    %c0_i32 = arith.constant 0 : i32
    %c0_i32_0 = arith.constant 0 : i32
    return %arg0, %c0_i32 : i32, i32
  }
  func.func @transform_3(%arg0: i32, %arg1: i32, %arg2: memref<2xf32, #tpu.memory_space<smem>>, %arg3: memref<1xi32, #tpu.memory_space<smem>>) -> (i32, i32) {
    %c0_i32 = arith.constant 0 : i32
    %c0_i32_0 = arith.constant 0 : i32
    return %arg0, %c0_i32 : i32, i32
  }
}

</mosaic_0001>

<bundles_post_ra>
// kernel: tpu_custom_call.1
= control target key start
LH: loop header
LB: loop body
LE: loop exit
PB: predicated region body
PF: predicated region fallthrough
CT: control target
= control target key end

     0   :  { %s277_s21 = smov [#allocation3]   ;;  %s329_s0 = inlined_call_operand.vmem [shape: f32[2], index: 0, kind: input, shape index: {}]   ;;  %s330_s1 = inlined_call_operand.<no memory space> [shape: s32[1], index: 1, kind: input, shape index: {}]   ;;  %s331_s2 = inlined_call_operand.hbm [shape: f32[16,128], index: 2, kind: input, shape index: {}]   ;;  %s332_s3 = inlined_call_operand.hbm [shape: f32[16,128], index: 3, kind: input, shape index: {}]   ;;  %s333_s4 = inlined_call_operand.hbm [shape: f32[8,128], index: 4, kind: output, shape index: {0}]   ;;  %s334_s5 = inlined_call_operand.hbm [shape: f32[8,128], index: 5, kind: output, shape index: {1}]  }
   0x1   :  { %s12_s20 = sshll.u32 %s329_s0, 4  ;;  %s13_s20 = int_to_ptr.vmem [resolvable:$true] %s12_s20 }
   0x2   :  { %15 = dma.vmem_to_smem %s13_s20, 16, %s277_s21, [#allocation2] }
   0x3   :  { %267 = dma.done.wait [#allocation2], 16 }
   0x4   :  { %268 = vsyncadd [#allocation2], 4294967280 }
   0x5   :  { %19 = sfence }
   0x6   :  { %20 = vsyncpa [#allocation6], 0 }
   0x7   :  { %21 = vsyncpa [#allocation9], 0 }
   0x8   :  { %22 = vsyncpa [#allocation7], 0 }
   0x9   :  { %23 = vsyncpa [#allocation12], 0  ;;  %s34_s23 = sshll.u32 %s331_s2, 4  ;;  %s278_s24 = smov [#allocation5]   ;;  %s35_s23 = int_to_ptr.hbm [resolvable:$true] %s34_s23 }
   0xa   :  { %s36_s25 = sshll.u32 %s278_s24, 4  ;;  %s53_s27 = sshll.u32 %s332_s3, 4  ;;  %s37_s25 = int_to_ptr.vmem [resolvable:$true] %s36_s25  ;;  %s54_s27 = int_to_ptr.hbm [resolvable:$true] %s53_s27 }
   0xb   :  { %s279_s28 = smov 128   ;;  %s280_s29 = smov 8  }
   0xc   :  { %42 = dma.hbm_to_vmem [thread:$0]  %s35_s23, 256, %s37_s25, [#allocation6], %s279_s28, %s279_s28, %s280_s29  }
   0xd   :  { %s281_s30 = smov [#allocation8]  }
   0xe   :  { %s55_s6 = sshll.u32 %s281_s30, 4  ;;  %s56_s6 = int_to_ptr.vmem [resolvable:$true] %s55_s6 }
   0xf   :  { %61 = dma.hbm_to_vmem [thread:$0]  %s54_s27, 256, %s56_s6, [#allocation9], %s279_s28, %s279_s28, %s280_s29  }
  0x10   :  { %269 = dma.done.wait [#allocation6], 256  }
  0x11   :  { %270 = vsyncadd [#allocation6], 4294967040 }
  0x12   :  { %271 = dma.done.wait [#allocation9], 256  }
  0x13   :  { %272 = vsyncadd [#allocation9], 4294967040  ;;  %s84_s2 = sld [smem:[#allocation3]]  ;;  %v86_v0 = vld [vmem:[#allocation5] sm:$0xff]  ;;  %v87_v1 = vld [vmem:[#allocation5 + $0x8] sm:$0xff]  ;;  %s282_s3 = smov [#allocation11]  }
  0x14   :  { %s150_s7 = sld [smem:[#allocation3 + $0x1]]  ;;  %v88_v2 = vld [vmem:[#allocation8] sm:$0xff]  ;;  %v89_v4 = vld [vmem:[#allocation8 + $0x8] sm:$0xff]  ;;  %s128_s8 = sshll.u32 %s282_s3, 4  ;;  %s129_s8 = int_to_ptr.vmem [resolvable:$true] %s128_s8 }
  0x15   :  { %v107_v6 = vand.u32 2147483647, %v88_v2  ;;  %v108_v11 = vand.u32 2147483647, %v89_v4  ;;  %s130_s11 = sshll.u32 %s334_s5, 4  ;;  %s283_s12 = smov [#allocation10]   ;;  %s131_s11 = int_to_ptr.hbm [resolvable:$true] %s130_s11 }
  0x16   :  { %s117_s13 = sshll.u32 %s283_s12, 4  ;;  %s119_s16 = sshll.u32 %s333_s4, 4  ;;  %s118_s13 = int_to_ptr.vmem [resolvable:$true] %s117_s13  ;;  %s120_s16 = int_to_ptr.hbm [resolvable:$true] %s119_s16 }
  0x17   :  { %v109_v14 = vadd.f32 %v108_v11, %v107_v6 }
  0x19   :  { %v95_v3 = vstv %s84_s2  ;;  %111 = vst [vmem:[#allocation11] sm:$0xff] %v109_v14 }
  0x1a   :  { %v90_v5 = vstv %s150_s7  ;;  %vm96_vm0 = vcmp.lt.f32.partialorder %v86_v0, %v95_v3  ;;  %vm97_vm1 = vcmp.lt.f32.partialorder %v87_v1, %v95_v3  ;;  %133 = dma.vmem_to_hbm [thread:$0]  %s129_s8, 128, %s131_s11, [#allocation12]  }
  0x1b   :  { %vm91_vm2 = vcmp.gt.f32.partialorder %v86_v0, %v90_v5  ;;  %vm92_vm3 = vcmp.gt.f32.partialorder %v87_v1, %v90_v5  ;;  %v98_v7 = vsel %vm96_vm0, %v88_v2, 0.0  ;;  %v99_v8 = vsel %vm97_vm1, %v89_v4, 0.0 }
  0x1c   :  { %v93_v9 = vsel %vm91_vm2, %v88_v2, 0.0  ;;  %v94_v10 = vsel %vm92_vm3, %v89_v4, 0.0 }
  0x1d   :  { %v100_v12 = vsub.f32 %v93_v9, %v98_v7  ;;  %v101_v13 = vsub.f32 %v94_v10, %v99_v8 }
  0x1f   :  { %v103_v15 = vadd.f32 %v101_v13, %v100_v12 }
  0x21   :  { %105 = vst [vmem:[#allocation10] sm:$0xff] %v103_v15 }
  0x22   :  { %122 = dma.vmem_to_hbm [thread:$0]  %s118_s13, 128, %s120_s16, [#allocation7]  }
  0x23   :  { %273 = dma.done.wait [#allocation7], 128  }
  0x24   :  { %274 = vsyncadd [#allocation7], 4294967168 }
  0x25   :  { %275 = dma.done.wait [#allocation12], 128  }
  0x26   :  { %276 = vsyncadd [#allocation12], 4294967168 }
  0x27   :  { %142 = vsyncpa [#allocation6], 1 }
  0x28   :  { %143 = vsyncpa [#allocation9], 1 }
  0x29   :  { %144 = vsyncpa [#allocation7], 1 }
  0x2a   :  { %145 = vsyncpa [#allocation12], 1 }

</bundles_post_ra>
